<compile_context>
chip_gen: v7x
topology: tpu7x:2x2x1
jax: 0.10.0
libtpu: 0.0.40
codegen_flags: <defaults>
</compile_context>

<pallas_src>
import functools

import jax
import jax.numpy as jnp
from jax.experimental import pallas as pl
from jax.experimental.pallas import tpu as pltpu


def _mean_pool_kernel(m_ref, h_ref, o_ref, *, precision):
    # m_ref: (TB, 1,  TS)  attention-mask tile (0/1, hidden dtype, lane-dense)
    # h_ref: (TB, TS, H )  hidden-state tile (native dtype)
    # o_ref: (TB, 1,  H )  f32 masked-sum accumulator (resident across k axis)
    k = pl.program_id(1)

    @pl.when(k == 0)
    def _():
        o_ref[...] = jnp.zeros_like(o_ref)

    # Batched (1 x TS) @ (TS x H) matvec on the MXU with f32 accumulation.
    o_ref[...] += jnp.einsum(
        "bqs,bsh->bqh",
        m_ref[...],
        h_ref[...],
        preferred_element_type=jnp.float32,
        precision=precision,
    )


def _round_up(x: int, m: int) -> int:
    return (x + m - 1) // m * m


def _round_down(x: int, m: int) -> int:
    return (x // m) * m


def _vmem_capacity_bytes() -> int:
    try:
        return int(pltpu.get_tpu_info().vmem_capacity_bytes)
    except Exception:
        return 64 << 20  # conservative: v7x has 64 MiB per TensorCore


def _pick_seq_tile(S: int, H: int, itemsize: int, target_bytes: int):
    """Returns (TS, S_pad). TS is either the full S, or a multiple of 128."""
    if S * H * itemsize <= target_bytes or S <= 128:
        return S, S
    row_bytes = H * itemsize
    ts = max(128, _round_down(target_bytes // row_bytes, 128))
    ts = min(ts, _round_up(S, 128))
    return ts, _round_up(S, ts)


def _pick_batch_tile(B: int, tb_cap: int, row_block_bytes: int,
                     target_bytes: int) -> int:
    """Largest divisor of B that is <= tb_cap and keeps the block in budget."""
    best = 1
    for tb in range(1, max(1, min(B, tb_cap)) + 1):
        if B % tb == 0 and (tb == 1 or tb * row_block_bytes <= target_bytes):
            best = tb
    return best


def mean_pooling(last_hidden_state: jax.Array, attention_mask: jax.Array,
                 *, target_block_bytes: int | None = None) -> jax.Array:
    """Masked mean pooling over the sequence dimension.

    last_hidden_state: (B, S, H) float (f32 / bf16, kept in native dtype)
    attention_mask:    (B, S)    int or float (0/1)
    returns:           (B, H)    float32 (matches torch promotion via mask.float())
    """
    B, S, H = last_hidden_state.shape
    dt = last_hidden_state.dtype
    itemsize = jnp.dtype(dt).itemsize

    vmem_cap = _vmem_capacity_bytes()
    if target_block_bytes is None:
        # ~8 MiB hidden tile per buffer (v7x-safe); ~16 MiB on 128-MiB parts.
        target_block_bytes = (16 << 20) if vmem_cap >= (96 << 20) else (8 << 20)

    TS, S_pad = _pick_seq_tile(S, H, itemsize, target_block_bytes)
    tb_cap = max(1, B // 2)  # >=2 batch blocks so v7x's 2 TensorCores both work
    TB = _pick_batch_tile(B, tb_cap, TS * H * itemsize, target_block_bytes)

    # Ragged S: zero-pad the sequence so every tile is full.  Padded rows carry
    # mask == 0 and contribute nothing; the denominator uses the raw mask.
    if S_pad != S:
        last_hidden_state = jnp.pad(
            last_hidden_state, ((0, 0), (0, S_pad - S), (0, 0)))
        mask_seq = jnp.pad(attention_mask, ((0, 0), (0, S_pad - S)))
    else:
        mask_seq = attention_mask
    # Lane-dense mask layout: seq axis maps to lanes -> contiguous DMA.
    mask3 = mask_seq.reshape(B, 1, S_pad).astype(dt)

    grid = (B // TB, S_pad // TS)  # reduction (sequence) axis last

    # VMEM footprint accounting: x2 double-buffering, (sublane, 128) padding.
    sub = {1: 32, 2: 16, 4: 8}.get(itemsize, 8)
    hid_blk = TB * _round_up(TS, sub) * _round_up(H, 128) * itemsize
    msk_blk = TB * sub * _round_up(TS, 128) * itemsize
    out_blk = TB * 8 * _round_up(H, 128) * 4
    footprint = 2 * (hid_blk + msk_blk + out_blk)
    vmem_limit = int(min(max(footprint + (4 << 20), 32 << 20), vmem_cap))

    # f32 inputs: force full-precision MXU passes so we match the f32 reference.
    precision = (jax.lax.Precision.HIGHEST if itemsize == 4
                 else jax.lax.Precision.DEFAULT)
    kernel = functools.partial(_mean_pool_kernel, precision=precision)

    num = pl.pallas_call(
        kernel,
        out_shape=jax.ShapeDtypeStruct((B, 1, H), jnp.float32),
        grid_spec=pltpu.PrefetchScalarGridSpec(
            num_scalar_prefetch=0,
            grid=grid,
            in_specs=[
                pl.BlockSpec((TB, 1, TS), lambda b, k: (b, 0, k)),
                pl.BlockSpec((TB, TS, H), lambda b, k: (b, k, 0)),
            ],
            out_specs=pl.BlockSpec((TB, 1, H), lambda b, k: (b, 0, 0)),
        ),
        compiler_params=pltpu.CompilerParams(
            dimension_semantics=("parallel", "arbitrary"),
            vmem_limit_bytes=vmem_limit,
        ),
    )(mask3, last_hidden_state)

    # Denominator hoisted out of the kernel (torch.clamp(min=1e-9) semantics).
    sum_mask = jnp.maximum(
        jnp.sum(attention_mask.astype(jnp.float32), axis=1), 1e-9)
    return num.reshape(B, H) / sum_mask[:, None]


def _reference_mean_pooling(last_hidden_state, attention_mask):
    # Pure-JAX reference mirroring the PyTorch module exactly.
    m = attention_mask[..., None].astype(jnp.float32)
    sum_embeddings = jnp.sum(last_hidden_state.astype(jnp.float32) * m, axis=1)
    sum_mask = jnp.maximum(jnp.sum(m, axis=1), 1e-9)
    return sum_embeddings / sum_mask


if __name__ == "__main__":
    key = jax.random.PRNGKey(0)
    k1, k2, k3, k4, k5, k6 = jax.random.split(key, 6)

    # 1) Small shape implied by the module: B=2, S=8, H=32 (single grid step).
    B, S, H = 2, 8, 32
    hs = jax.random.normal(k1, (B, S, H), dtype=jnp.float32)
    am = (jax.random.uniform(k2, (B, S)) > 0.3).astype(jnp.int32)
    am = am.at[:, 0].set(1)
    out = jax.block_until_ready(mean_pooling(hs, am))
    ref = _reference_mean_pooling(hs, am)
    assert out.shape == (B, H)
    assert jnp.allclose(out, ref, atol=1e-4, rtol=1e-4)

    # 2) bf16 inputs + longer sequence: bf16 MXU passes, f32 accumulation.
    B2, S2, H2 = 2, 1024, 256
    hs2 = jax.random.normal(k3, (B2, S2, H2), dtype=jnp.bfloat16)
    am2 = (jax.random.uniform(k4, (B2, S2)) > 0.5).astype(jnp.int32)
    am2 = am2.at[:, 0].set(1)
    out2 = jax.block_until_ready(mean_pooling(hs2, am2))
    ref2 = _reference_mean_pooling(hs2, am2)
    assert out2.shape == (B2, H2)
    assert jnp.allclose(out2, ref2, atol=2e-3, rtol=2e-3)

    # 3) Ragged S with a forced small block budget: exercises the multi-step
    #    sequence reduction, the resident-output accumulator and tail padding.
    B3, S3, H3 = 4, 300, 128
    hs3 = jax.random.normal(k5, (B3, S3, H3), dtype=jnp.float32)
    am3 = (jax.random.uniform(k6, (B3, S3)) > 0.4).astype(jnp.int32)
    am3 = am3.at[:, 0].set(1)
    out3 = jax.block_until_ready(
        mean_pooling(hs3, am3, target_block_bytes=64 * 1024))
    ref3 = _reference_mean_pooling(hs3, am3)
    assert out3.shape == (B3, H3)
    assert jnp.allclose(out3, ref3, atol=1e-4, rtol=1e-4)

    print("KERNEL_OK")
</pallas_src>

<mosaic_0001>
module attributes {stable_mosaic.version = 11 : i64} {
  func.func @_mean_pool_kernel(%arg0: i32, %arg1: i32, %arg2: memref<1x1x8xf32, #tpu.memory_space<vmem>>, %arg3: memref<1x8x32xf32, #tpu.memory_space<vmem>>, %arg4: memref<1x1x32xf32, #tpu.memory_space<vmem>>) attributes {dimension_semantics = [#tpu.dimension_semantics<parallel>, #tpu.dimension_semantics<arbitrary>], iteration_bounds = array<i64: 2, 1>, scalar_prefetch = 0 : i64, scratch_operands = 0 : i64, tpu.core_type = #tpu.core_type<tc>, window_params = [{transform_indices = @transform_0, window_bounds = array<i64: 1, 1, 8>}, {transform_indices = @transform_1, window_bounds = array<i64: 1, 8, 32>}, {transform_indices = @transform_2, window_bounds = array<i64: 1, 1, 32>}]} {
    %c0_i32 = arith.constant 0 : i32
    %0 = arith.cmpi eq, %arg1, %c0_i32 : i32
    %1 = arith.extui %0 : i1 to i32
    %c0_i32_0 = arith.constant 0 : i32
    %2 = arith.cmpi ne, %1, %c0_i32_0 : i32
    scf.if %2 {
      %cst_12 = arith.constant 0.000000e+00 : f32
      %9 = vector.broadcast %cst_12 : f32 to vector<1x1x32xf32>
      %c0_13 = arith.constant 0 : index
      %c0_14 = arith.constant 0 : index
      %c0_15 = arith.constant 0 : index
      %10 = vector.load %arg4[%c0_13, %c0_14, %c0_15] : memref<1x1x32xf32, #tpu.memory_space<vmem>>, vector<1x1x32xf32>
      tpu.vector_store %arg4[%c0_13, %c0_14, %c0_15], %9 {strides = array<i32>} : memref<1x1x32xf32, #tpu.memory_space<vmem>>, vector<1x1x32xf32>,
    } else {
    }
    %c0 = arith.constant 0 : index
    %c0_1 = arith.constant 0 : index
    %c0_2 = arith.constant 0 : index
    %3 = vector.load %arg4[%c0, %c0_1, %c0_2] : memref<1x1x32xf32, #tpu.memory_space<vmem>>, vector<1x1x32xf32>
    %c0_3 = arith.constant 0 : index
    %c0_4 = arith.constant 0 : index
    %c0_5 = arith.constant 0 : index
    %4 = vector.load %arg2[%c0_3, %c0_4, %c0_5] : memref<1x1x8xf32, #tpu.memory_space<vmem>>, vector<1x1x8xf32>
    %c0_6 = arith.constant 0 : index
    %c0_7 = arith.constant 0 : index
    %c0_8 = arith.constant 0 : index
    %5 = vector.load %arg3[%c0_6, %c0_7, %c0_8] : memref<1x8x32xf32, #tpu.memory_space<vmem>>, vector<1x8x32xf32>
    "tpu.trace_start"() <{level = 10 : i32, message = "bqs,bsh->bqh"}> : () -> ()
    %cst = arith.constant dense<0.000000e+00> : vector<1x1x32xf32>
    %6 = tpu.matmul %4, %5, %cst {dimension_numbers = #tpu.dot_dimension_numbers<[2], [1], [1], [2], [0, 0, 0, 1, 1, 2], [0], [0]>, precision = #tpu.contract_precision<fp32>} : vector<1x1x8xf32>, vector<1x8x32xf32>, vector<1x1x32xf32> -> vector<1x1x32xf32>
    "tpu.trace_stop"() : () -> ()
    %7 = arith.addf %3, %6 : vector<1x1x32xf32>
    %c0_9 = arith.constant 0 : index
    %c0_10 = arith.constant 0 : index
    %c0_11 = arith.constant 0 : index
    %8 = vector.load %arg4[%c0_9, %c0_10, %c0_11] : memref<1x1x32xf32, #tpu.memory_space<vmem>>, vector<1x1x32xf32>
    tpu.vector_store %arg4[%c0_9, %c0_10, %c0_11], %7 {strides = array<i32>} : memref<1x1x32xf32, #tpu.memory_space<vmem>>, vector<1x1x32xf32>,
    return
  }
  func.func @transform_0(%arg0: i32, %arg1: i32) -> (i32, i32, i32) {
    %c0_i32 = arith.constant 0 : i32
    %c0_i32_0 = arith.constant 0 : i32
    return %arg0, %c0_i32, %arg1 : i32, i32, i32
  }
  func.func @transform_1(%arg0: i32, %arg1: i32) -> (i32, i32, i32) {
    %c0_i32 = arith.constant 0 : i32
    %c0_i32_0 = arith.constant 0 : i32
    return %arg0, %arg1, %c0_i32 : i32, i32, i32
  }
  func.func @transform_2(%arg0: i32, %arg1: i32) -> (i32, i32, i32) {
    %c0_i32 = arith.constant 0 : i32
    %c0_i32_0 = arith.constant 0 : i32
    %c0_i32_1 = arith.constant 0 : i32
    return %arg0, %c0_i32, %c0_i32_0 : i32, i32, i32
  }
}

</mosaic_0001>

<bundles_post_ra>
// kernel: tpu_custom_call.1
= control target key start
LH: loop header
LB: loop body
LE: loop exit
PB: predicated region body
PF: predicated region fallthrough
CT: control target
= control target key end

     0   :  { %7 = vsyncpa [#allocation3], 0  ;;  %s1298_s0 = inlined_call_operand.hbm [shape: f32[2,1,8], index: 0, kind: input, shape index: {}]   ;;  %s1299_s1 = inlined_call_operand.hbm [shape: f32[2,8,32], index: 1, kind: input, shape index: {}]   ;;  %s1300_s2 = inlined_call_operand.hbm [shape: f32[2,1,32], index: 2, kind: output, shape index: {}]  }
   0x1   :  { %9 = vsyncpa [#allocation3 + $0x1], 0 }
   0x2   :  { %10 = vsyncpa [#allocation6], 0 }
   0x3   :  { %12 = vsyncpa [#allocation6 + $0x1], 0 }
   0x4   :  { %13 = vsyncpa [#allocation4], 0 }
   0x5   :  { %15 = vsyncpa [#allocation4 + $0x1], 0  ;;  %s1072_s9 = smov 0   ;;  %s1074_s10 = smov 0  }
   0x6   :  { %s1076_s11 = smov 0   ;;  %s1078_s12 = smov 0  }
   0x7   :  { %s1080_s13 = smov 0   ;;  %s1082_s14 = smov 0  }
   0x8 LB: > { %s781_s15 = sadd.s32 4294967295, %s1050_s14   ;;  %s782_s16 = sadd.s32 4294967294, %s1050_s14   ;;  %s1050_s14 = sphi %s1082_s14, %s21_s14   ;;  %s1046_s13 = sphi %s1080_s13, %s1320_s13   ;;  %s1042_s12 = sphi %s1078_s12, %s1319_s12   ;;  %s1038_s11 = sphi %s1076_s11, %s1318_s11   ;;  %s1034_s10 = sphi %s1074_s10, %s1317_s10   ;;  %s1030_s9 = sphi %s1072_s9, %s1316_s9  }
   0x9   : > { %s33_s17 = sadd.s32 1, %s1046_s13  ;;  %s42_s18 = sadd.s32 1, %s1038_s11 }
   0xa   : > { %p35_p0 = scmp.ge.s32.totalorder %s33_s17, 2  ;;  %p49_p1 = scmp.ne.s32.totalorder %s1038_s11, %s1034_s10 }
   0xb   : > { %p50_p2 = scmp.eq.s32.totalorder %s1050_s14, 0  ;;  %p55_p3 = scmp.ne.s32.totalorder %s1034_s10, %s1030_s9 }
   0xc   : > { %s1322_s17 = smov (%p35_p0, %s33_s17), 0  ;;  %p56_p5 = scmp.eq.s32.totalorder %s781_s15, 0 }
   0xd   : > { %p1113_p4 = por %p50_p2, %p49_p1  ;;  %s37_s20 = ssub.s32 %s1046_s13, %s1322_s17 }
   0xe   : > { %p107_p6 = scmp.eq.s32.totalorder %s781_s15, 1  ;;  %p40_p7 = scmp.eq.s32.totalorder %s37_s20, 0 }
   0xf   : > { %p1119_p8 = por %p56_p5, %p55_p3  ;;  %p113_p10 = scmp.eq.s32.totalorder %s782_s16, 1 }
  0x10   : > { %p1123_p9 = por %p107_p6, %p49_p1  ;;  %p852_p13 = scmp.lt.s32.totalorder %s1050_s14, 2 }
  0x11   : > { %s1304_s21 = scalar_select %p1119_p8, 1, 0 }
  0x12   : > { %s1305_s22 = scalar_select %p1123_p9, 1, 0 }
  0x13   : > { %s1128_s23 = scalar_select %p40_p7, %s1038_s11, %s42_s18  }
  0x14   : > { %p1130_p11 = por %p113_p10, %p55_p3  ;;  %s1137_s25 = sand.u32 1, %s1038_s11  }
  0x15   : > { %s785_s26 = sshll.u32 %s1046_s13, 4  ;;  %s136_s27 = scalar_lea.vmem [#allocation2], %s1137_s25 }
  0x16   : > { %s1306_s24 = scalar_select %p1130_p11, 1, 0 }
  0x17   : > { %s144_s28 = sshll.u32 %s136_s27, 4  ;;  %s1144_s3 = scalar_lea.hbm %s1298_s0, %s785_s26  ;;  %s1146_s28 = int_to_ptr.vmem [resolvable:$true] %s144_s28 }
  0x18   : > { %p1150_p0 = pnand %p852_p13, %p1113_p4  ;;  %s786_s5 = sshll.u32 %s1137_s25, 3 }
  0x19   : > { %s134_s6 = scalar_lea.sflag [#allocation3], %s1137_s25  ;;  %s904_s7 = scalar_lea.hbm %s1144_s3, 16 }
  0x1a   : > { %p905_p3 = scmp.ne.s32.totalorder %s1144_s3, %s904_s7  ;;  %p906_p5 = pneg %p1150_p0 }
  0x1b   : > { %s909_s16 = scalar_lea.hbm %s1298_s0, 32  ;;  %p910_p4 = scmp.lt.u32.totalorder %s1144_s3, %s1298_s0 }
  0x1c   : > { %p907_p6 = pnand %p906_p5, %p905_p3  ;;  %p911_p10 = scmp.lt.u32.totalorder %s909_s16, %s904_s7 }
  0x1d   : > { %p913_p12 = scmp.lt.u32.totalorder %s904_s7, %s1144_s3 }
  0x1e   : > { %p908_p7 = pneg %p907_p6  ;;  %p912_p13 = por %p911_p10, %p910_p4 }
  0x20   : > { %p914_p1 = por %p913_p12, %p912_p13 }
  0x22   : > { %p915_p2 = pnand %p914_p1, %p908_p7 }
  0x24   : > { %918 = shalt.err (!%p915_p2)
}
  0x25   : > { %s919_s20 = scalar_lea.vmem %s1146_s28, 16  ;;  %s1052_s26 = smov [#allocation2]  }
  0x26   : > { %p920_p3 = scmp.ne.s32.totalorder %s1146_s28, %s919_s20  ;;  %s924_s27 = sshll.u32 %s1052_s26, 4  ;;  %s925_s27 = int_to_ptr.vmem [resolvable:$false] %s924_s27 }
  0x27   : > { %s926_s29 = scalar_lea.vmem %s925_s27, 32  ;;  %p927_p9 = scmp.lt.s32.totalorder %s1146_s28, %s925_s27 }
  0x28   : > { %p922_p6 = pnand %p920_p3, %p906_p5  ;;  %p928_p4 = scmp.lt.s32.totalorder %s926_s29, %s919_s20 }
  0x2a   : > { %p923_p11 = pneg %p922_p6  ;;  %p929_p10 = por %p928_p4, %p927_p9 }
  0x2c   : > { %p930_p12 = pnand %p929_p10, %p923_p11 }
  0x2e   : > { %933 = shalt.err (!%p930_p12)
}
  0x2f   : > { %844 = dma.hbm_to_vmem [thread:$0]  (!%p1150_p0), %s1144_s3, 16, %s1146_s28, %s134_s6  }
  0x30   : > { %p1308_p1 = scmp.lt.s32.totalorder %s1050_s14, 3  ;;  %p1309_p2 = scmp.ge.s32.totalorder %s1050_s14, 1 }
  0x31   : > { %s787_s7 = sshll.u32 %s1046_s13, 7  ;;  %s155_s8 = scalar_lea.vmem [#allocation5], %s786_s5 }
  0x32   : > { %p1187_p7 = pnand %p1309_p2, %p1308_p1  ;;  %s163_s15 = sshll.u32 %s155_s8, 4  ;;  %s164_s15 = int_to_ptr.vmem [resolvable:$true] %s163_s15 }
  0x33   : > { %s1197_s19 = scalar_lea.hbm %s1299_s1, %s787_s7  ;;  %s152_s28 = scalar_lea.sflag [#allocation6], %s1137_s25 }
  0x34   : > { %s1310_s30 = scalar_select %p1187_p7, 1, 0 }
  0x35   : > { %s934_s3 = scalar_lea.hbm %s1197_s19, 128  ;;  %s939_s20 = scalar_lea.hbm %s1299_s1, 256 }
  0x36   : > { %p935_p9 = scmp.ne.s32.totalorder %s1197_s19, %s934_s3  ;;  %p940_p3 = scmp.lt.u32.totalorder %s1197_s19, %s1299_s1 }
  0x37   : > { %p941_p6 = scmp.lt.u32.totalorder %s939_s20, %s934_s3  ;;  %p943_p10 = scmp.lt.u32.totalorder %s934_s3, %s1197_s19 }
  0x38   : > { %p937_p11 = pnand %p935_p9, %p906_p5 }
  0x39   : > { %p942_p4 = por %p941_p6, %p940_p3 }
  0x3a   : > { %p938_p13 = pneg %p937_p11 }
  0x3b   : > { %p944_p12 = por %p943_p10, %p942_p4 }
  0x3d   : > { %p945_p1 = pnand %p944_p12, %p938_p13 }
  0x3f   : > { %948 = shalt.err (!%p945_p1)
}
  0x40   : > { %s949_s25 = scalar_lea.vmem %s164_s15, 128  ;;  %s1053_s29 = smov [#allocation5]  }
  0x41   : > { %p950_p2 = scmp.ne.s32.totalorder %s164_s15, %s949_s25  ;;  %s954_s7 = sshll.u32 %s1053_s29, 4  ;;  %s955_s7 = int_to_ptr.vmem [resolvable:$false] %s954_s7 }
  0x42   : > { %s956_s8 = scalar_lea.vmem %s955_s7, 256  ;;  %p957_p8 = scmp.lt.s32.totalorder %s164_s15, %s955_s7 }
  0x43   : > { %p952_p9 = pnand %p950_p2, %p906_p5  ;;  %p958_p7 = scmp.lt.s32.totalorder %s956_s8, %s949_s25 }
  0x45   : > { %p953_p11 = pneg %p952_p9  ;;  %p959_p3 = por %p958_p7, %p957_p8 }
  0x47   : > { %p960_p6 = pnand %p959_p3, %p953_p11 }
  0x49   : > { %963 = shalt.err (!%p960_p6)
}
  0x4a   : > { %847 = dma.hbm_to_vmem [thread:$0]  (!%p1150_p0), %s1197_s19, 128, %s164_s15, %s152_s28  }
  0x4b   : > { %p1311_p13 = scmp.ne.s32.totalorder %s1310_s30, 0 }
  0x4c   : > { %s1222_s16 = sand.u32 (!%p1311_p13), 1, %s1034_s10   ;;  %p1312_p5 = scmp.ne.s32.totalorder (!%p1311_p13), %s1304_s21, 0 }
  0x4d   : > { %172 = sbr.rel (%p1311_p13) target bundleno = 341 (0x155), region = 28  ;;  %s175_s18 = scalar_lea.sflag (!%p1311_p13), [#allocation3], %s1222_s16 }
  0x4e   : > { %s177_s3 = scalar_lea.vmem (!%p1311_p13), [#allocation2], %s1222_s16 }
  0x54   : > { %1017 = dma.done.wait (%p1312_p5), %s175_s18, 16  }
  0x55   : > { %1019 = vsyncadd (%p1312_p5), %s175_s18, 4294967280  ;;  %s789_s4 = sshll.u32 %s1222_s16, 3  ;;  %s183_s15 = scalar_lea.sflag [#allocation6], %s1222_s16 }
  0x56   : > { %s186_s30 = scalar_lea.vmem [#allocation5], %s789_s4 }
  0x57   : > { %1021 = dma.done.wait (%p1312_p5), %s183_s15, 128  }
  0x58   : > { %1023 = vsyncadd (%p1312_p5), %s183_s15, 4294967168  ;;  %v1054_v0 = vmov 0.0   ;;  %vm1055_vm0 = vmmov 0   ;;  %vm219_vm1 = vcmask 64512   ;;  %v218_v1 = vld [vmem:[%s186_s30] sm:$0xff]  ;;  %vm214_vm2 = vcmask 253952  }
  0x59   : > { %805 = vmatprep.subr.mxu0 %v1054_v0  ;;  %810 = vmatprep.subr.mxu1 %v1054_v0  ;;  %v217_v2 = vld [vmem:[%s177_s3] sm:$0x1]  ;;  %v224_v3 = vand.u32 4294901760, %v218_v1  ;;  %s209_s21 = scalar_lea.vmem [#allocation7], %s1222_s16  ;;  %s790_s19 = sshll.u32 %s1042_s12, 4 }
  0x5a   : > { %807 = vmatprep.mubr.msk.f32.mxu0 %vm1055_vm0, %v1054_v0  ;;  %812 = vmatprep.mubr.msk.f32.mxu1 %vm1055_vm0, %v1054_v0  ;;  %v221_v4 = vsel %vm219_vm1, %v217_v2, 0  ;;  %215 = vst.msk [vmem:[%s209_s21] sm:$0x1] %vm214_vm2, %v1054_v0  ;;  %s685_s28 = sshll.u32 %s209_s21, 4  ;;  %s1248_s20 = scalar_lea.hbm %s1300_s2, %s790_s19  ;;  %s1250_s28 = int_to_ptr.vmem [resolvable:$true] %s685_s28 }
  0x5b   : > { %v289_v5 = vand.u32 4294901760, %v221_v4  ;;  %806 = vmatpush3.msra.mxu0 %v224_v3  ;;  %v301_v6 = vsub.f32 %v218_v1, %v224_v3  ;;  %s673_s26 = scalar_lea.sflag [#allocation4], %s1222_s16  ;;  %s964_s27 = scalar_lea.vmem %s1250_s28, 16 }
  0x5c   : > { %815 = vmatprep.subr.mxu0 %v1054_v0  ;;  %p965_p8 = scmp.ne.s32.totalorder %s1250_s28, %s964_s27  ;;  %p1313_p0 = scmp.ne.s32.totalorder %s1305_s22, 0 }
  0x5d   : > { %v290_v7 = vsub.f32 %v221_v4, %v289_v5  ;;  %v302_v8 = vand.u32 4294901760, %v301_v6  ;;  %s1056_s12 = smov [#allocation7]  }
  0x5e   : > { %p966_p7 = pnand %p965_p8, %p1313_p0  ;;  %s968_s25 = sshll.u32 %s1056_s12, 4  ;;  %s969_s25 = int_to_ptr.vmem [resolvable:$false] %s968_s25 }
  0x5f   : > { %v291_v9 = vand.u32 4294901760, %v290_v7  ;;  %v303_v10 = vsub.f32 %v301_v6, %v302_v8  ;;  %s970_s29 = scalar_lea.vmem %s969_s25, 32  ;;  %p971_p10 = scmp.lt.s32.totalorder %s1250_s28, %s969_s25 }
  0x60   : > { %p967_p4 = pneg %p966_p7  ;;  %p972_p12 = scmp.lt.s32.totalorder %s970_s29, %s964_s27 }
  0x61   : > { %v292_v11 = vsub.f32 %v290_v7, %v291_v9  ;;  %v304_v12 = vand.u32 4294901760, %v303_v10  ;;  %v216_v30 = vld [vmem:[%s209_s21] sm:$0x1] }
  0x62   : > { %p973_p1 = por %p972_p12, %p971_p10 }
  0x63   : > { %v293_v13 = vand.u32 4294901760, %v292_v11  ;;  %811 = vmatpush3.msra.mxu1 %v304_v12 }
  0x64   : > { %813 = vmatmul.mubr.f32.vlgmr.msra.gmra.mrb[0].mxu1 %v289_v5  ;;  %820 = vmatprep.subr.mxu1 %v1054_v0  ;;  %p974_p2 = pnand %p973_p1, %p967_p4 }
  0x65   : > { %808 = vmatmul.mubr.f32.vlgmr.msra.gmra.mrb[0].mxu0 %v293_v13  ;;  %821 = vmatpush3.msra.mxu1 %v224_v3 }
  0x66   : > { %816 = vmatpush3.msra.mxu0 %v301_v6  ;;  %817 = vmatprep.mubr.msk.f32.mxu0 %vm1055_vm0, %v1054_v0 }
  0x67   : > { %825 = vmatprep.subr.mxu0 %v1054_v0  ;;  %822 = vmatprep.mubr.msk.f32.mxu1 %vm1055_vm0, %v1054_v0 }
  0x68   : > { %823 = vmatmul.mubr.f32.vlgmr.msra.gmra.mrb[2].mxu1 %v291_v9  ;;  %830 = vmatprep.subr.mxu1 %v1054_v0 }
  0x69   : > { %818 = vmatmul.mubr.f32.vlgmr.msra.gmra.mrb[2].mxu0 %v290_v7  ;;  %831 = vmatpush3.msra.mxu1 %v224_v3 }
  0x6a   : > { %826 = vmatpush3.msra.mxu0 %v302_v8  ;;  %827 = vmatprep.mubr.msk.f32.mxu0 %vm1055_vm0, %v1054_v0 }
  0x6b   : > { %832 = vmatprep.mubr.msk.f32.mxu1 %vm1055_vm0, %v1054_v0 }
  0x6c   : > { %833 = vmatmul.mubr.f32.vlgmr.msra.gmra.mrb[4].mxu1 %v289_v5 }
  0x6d   : > { %828 = vmatmul.mubr.f32.vlgmr.msra.gmra.mrb[4].mxu0 %v289_v5 }
 0x137   : > { %v371_v15 = vpop.f32.mrb[0].mxu1 }
 0x138   : > { %v295_v14 = vpop.f32.mrb[0].mxu0  ;;  %v814_v18 = vpop.f32.mrb[1].mxu1 }
 0x139   : > { %v372_v16 = vadd.f32 %v371_v15, %v295_v14  ;;  %v809_v17 = vpop.f32.mrb[1].mxu0 }
 0x13b   : > { %v519_v20 = vpop.f32.mrb[2].mxu1 }
 0x13c   : > { %v445_v19 = vpop.f32.mrb[2].mxu0  ;;  %v824_v23 = vpop.f32.mrb[3].mxu1 }
 0x13d   : > { %v446_v21 = vadd.f32 %v445_v19, %v372_v16  ;;  %v819_v22 = vpop.f32.mrb[3].mxu0 }
 0x13f   : > { %v520_v24 = vadd.f32 %v519_v20, %v446_v21  ;;  %v665_v26 = vpop.f32.mrb[4].mxu1 }
 0x140   : > { %v593_v25 = vpop.f32.mrb[4].mxu0  ;;  %v834_v29 = vpop.f32.mrb[5].mxu1 }
 0x141   : > { %v594_v27 = vadd.f32 %v593_v25, %v520_v24  ;;  %v829_v28 = vpop.f32.mrb[5].mxu0 }
 0x143   : > { %v666_v31 = vadd.f32 %v665_v26, %v594_v27 }
 0x145   : > { %v669_v32 = vadd.f32 %v666_v31, %v216_v30 }
 0x147   : > { %671 = vst.msk [vmem:[%s209_s21] sm:$0x1] %vm214_vm2, %v669_v32 }
 0x148   : > { %977 = shalt.err (!%p974_p2)
}
 0x149   : > { %s978_s7 = scalar_lea.hbm %s1248_s20, 16  ;;  %s982_s18 = scalar_lea.hbm %s1300_s2, 32 }
 0x14a   : > { %p979_p9 = scmp.ne.s32.totalorder %s1248_s20, %s978_s7  ;;  %p983_p6 = scmp.lt.u32.totalorder %s1248_s20, %s1300_s2 }
 0x14b   : > { %p984_p13 = scmp.lt.u32.totalorder %s982_s18, %s978_s7  ;;  %p986_p8 = scmp.lt.u32.totalorder %s978_s7, %s1248_s20 }
 0x14c   : > { %p980_p11 = pnand %p979_p9, %p1313_p0 }
 0x14d   : > { %p985_p5 = por %p984_p13, %p983_p6 }
 0x14e   : > { %p981_p3 = pneg %p980_p11 }
 0x14f   : > { %p987_p7 = por %p986_p8, %p985_p5 }
 0x151   : > { %p988_p4 = pnand %p987_p7, %p981_p3 }
 0x153   : > { %991 = shalt.err (!%p988_p4)
}
 0x154   : > { %839 = dma.vmem_to_hbm [thread:$0]  (%p1313_p0), %s1250_s28, 16, %s1248_s20, %s673_s26  }
 0x155 PF: > { %s697_s15 = sand.u32 1, %s1030_s9   ;;  %p1314_p10 = scmp.ne.s32.totalorder %s1306_s24, 0 }
 0x156   : > { %p1315_p12 = scmp.ge.s32.totalorder %s1050_s14, 2  ;;  %s698_s30 = scalar_lea.sflag [#allocation4], %s697_s15 }
 0x158   : > { %p849_p1 = pnand %p1315_p12, %p1314_p10 }
 0x15a   : > { %1025 = dma.done.wait (!%p849_p1), %s698_s30, 16  }
 0x15b   : > { %1027 = vsyncadd (!%p849_p1), %s698_s30, 4294967280  ;;  %s21_s14 = sadd.s32 1, %s1050_s14   ;;  %s1316_s9 = smov %s1034_s10 }
 0x15c   : > { %p18_p2 = scmp.ge.s32.totalorder %s21_s14, 4   ;;  %s1317_s10 = smov %s1038_s11 }
 0x15d   : > { %s1318_s11 = smov %s1128_s23  ;;  %s1319_s12 = smov %s1046_s13 }
 0x15e   : > { %s1320_s13 = smov %s1322_s17  ;;  %20 = sbr.rel (!%p18_p2) target bundleno = 8 (0x8), region = 90 }
 0x165   :  { %702 = vsyncpa [#allocation3], 1 }
 0x166   :  { %704 = vsyncpa [#allocation3 + $0x1], 1 }
 0x167   :  { %705 = vsyncpa [#allocation6], 1 }
 0x168   :  { %707 = vsyncpa [#allocation6 + $0x1], 1 }
 0x169   :  { %708 = vsyncpa [#allocation4], 1 }
 0x16a   :  { %710 = vsyncpa [#allocation4 + $0x1], 1 }

</bundles_post_ra>
